<compile_context>
chip_gen: v7x
topology: tpu7x:2x2x1
jax: 0.10.0
libtpu: 0.0.40
codegen_flags: <defaults>
</compile_context>

<pallas_src>
import math

import jax
import jax.numpy as jnp
import numpy as np
from jax import lax
from jax.experimental import pallas as pl
from jax.experimental.pallas import tpu as pltpu

# Small, TPU-friendly versions of the module's hyper-parameters.
INPUT_SIZE = 16
HIDDEN_SIZE = 32
OUTPUT_SIZE = 24
SEQ_LEN = 8

LW = 128                    # padded lane width (native f32 vreg width)
I2 = 2 * INPUT_SIZE         # 32: real width of stacked [x | reverse(x)]
H2 = 2 * HIDDEN_SIZE        # 64: real width of fused [h_fwd | h_bwd]

# Packed parameter buffer row offsets (all 8-sublane aligned).
R_WIH = 0                   # (128,128) block-diag input weights (rows 0..31 real)
R_BIH = R_WIH + LW          # (1,128)   fused biases [b_f | b_b | 0]   (8-row slot)
R_WHH = R_BIH + 8           # (128,128) block-diag recurrent weights (rows 0..63 real)
R_WOUT = R_WHH + LW         # (128,128) output weights (rows 0..63, cols 0..23 real)
R_BOUT = R_WOUT + LW        # (1,128)   output bias; pad cols = -1e30  (8-row slot)
R_TOTAL = R_BOUT + 8        # 400 rows x 128 f32  (~200 KiB, trivially fits VMEM)

# Merged input buffer layout.
R_H0 = SEQ_LEN              # h0 row sits right below the SEQ_LEN x rows
XIN_ROWS = 16               # 8 x rows + 1 h0 row, padded to 16 (8-aligned)


def rnn_light_kernel(xin_ref, prm_ref, out_ref):
    T = SEQ_LEN

    # Both directions' input projections in ONE matmul; row t of xin holds
    # [x_t | x_{T-1-t} | 0...] and W_ih is block-diagonal, so xcat row t is
    # [xf_t proj | xb_{T-1-t} proj | 0...].  Lives in vregs (no scratch).
    x2 = xin_ref[0:T, :]                                        # (T, 128)
    xcat = (jnp.dot(x2, prm_ref[R_WIH:R_WIH + LW, :],
                    preferred_element_type=jnp.float32)
            + prm_ref[R_BIH:R_BIH + 1, :])                      # (T, 128)

    # Fused bidirectional recurrence, fully unrolled (T is static):
    #   h = [h_f | h_b | 0...];  h <- tanh(xcat_t + h @ blockdiag(Whh_f, Whh_b))
    # Pad lanes stay exactly zero (zero weights, zero bias, tanh(0)=0).
    w_hh = prm_ref[R_WHH:R_WHH + LW, :]                         # (128, 128)
    h = xin_ref[R_H0:R_H0 + 1, :]                               # (1, 128)
    for t in range(T):
        h = jnp.tanh(xcat[t:t + 1, :]
                     + jnp.dot(h, w_hh, preferred_element_type=jnp.float32))

    # Output Linear on concat(h_f, h_b): one lane-dense matmul.  Padded bias
    # columns are -1e30, so the log-softmax over the full 128 lanes is exact
    # for the first OUTPUT_SIZE columns (pad lanes contribute exp(-1e30)=0).
    logits = (jnp.dot(h, prm_ref[R_WOUT:R_WOUT + LW, :],
                      preferred_element_type=jnp.float32)
              + prm_ref[R_BOUT:R_BOUT + 1, :])                  # (1, 128)

    # Dropout(0.1) is identity in eval mode; LogSoftmax over dim=1.
    m = jnp.max(logits, axis=1, keepdims=True)
    lse = m + jnp.log(jnp.sum(jnp.exp(logits - m), axis=1, keepdims=True))
    logp = logits - lse                                         # (1, 128)

    # Single merged, full-tile output: row 0 = log-probs (cols >= O garbage),
    # row 1 = [h_f | h_b | 0...].  One unmasked (8,128) store, one DMA.
    out_ref[...] = jnp.concatenate(
        [logp, h, jnp.zeros((6, LW), jnp.float32)], axis=0)


def pack_params(p):
    """Pack the 9 parameter tensors into one (R_TOTAL, 128) f32 buffer."""
    H, O = HIDDEN_SIZE, OUTPUT_SIZE
    buf = jnp.zeros((R_TOTAL, LW), jnp.float32)
    # Block-diagonal input weights (pre-transposed: (I, H) per direction).
    buf = buf.at[R_WIH:R_WIH + INPUT_SIZE, 0:H].set(p["wih_f"])
    buf = buf.at[R_WIH + INPUT_SIZE:R_WIH + I2, H:H2].set(p["wih_b"])
    # Fused input+hidden biases.
    buf = buf.at[R_BIH, 0:H].set(p["b_f"][0])
    buf = buf.at[R_BIH, H:H2].set(p["b_b"][0])
    # Block-diagonal recurrent weights.
    buf = buf.at[R_WHH:R_WHH + H, 0:H].set(p["whh_f"])
    buf = buf.at[R_WHH + H:R_WHH + H2, H:H2].set(p["whh_b"])
    # Output weights (rows: [h_f part ; h_b part], cols: O real logits).
    buf = buf.at[R_WOUT:R_WOUT + H, 0:O].set(p["w_out_f"])
    buf = buf.at[R_WOUT + H:R_WOUT + H2, 0:O].set(p["w_out_b"])
    # Output bias; padded columns get -1e30 so full-width log-softmax is exact.
    buf = buf.at[R_BOUT, 0:O].set(p["b_out"][0])
    buf = buf.at[R_BOUT, O:].set(-1e30)
    return buf


def _pack_inputs(x, h0):
    """Merge x, reverse(x) and h0 into one lane-dense (XIN_ROWS, 128) buffer."""
    T = x.shape[0]
    xin = jnp.zeros((XIN_ROWS, LW), jnp.float32)
    xin = xin.at[0:T, 0:INPUT_SIZE].set(x)                 # forward inputs
    xin = xin.at[0:T, INPUT_SIZE:I2].set(x[::-1])          # backward inputs
    xin = xin.at[R_H0, 0:H2].set(h0.reshape(H2))           # [h_f0 | h_b0]
    return xin


@jax.jit
def rnn_light_forward(x, h0, packed_params):
    """x: (T, I) f32, h0: (2, 1, H) f32 -> (logp (1, O), hidden (2, 1, H))."""
    xin = _pack_inputs(x, h0)
    vmem = pl.BlockSpec(memory_space=pltpu.MemorySpace.VMEM)
    out = pl.pallas_call(
        rnn_light_kernel,
        out_shape=jax.ShapeDtypeStruct((8, LW), jnp.float32),
        in_specs=[vmem, vmem],
        out_specs=vmem,
    )(xin, packed_params)
    logp = out[0:1, :OUTPUT_SIZE]                          # (1, O)
    hidden = out[1, :H2].reshape(2, 1, HIDDEN_SIZE)        # (2, 1, H)
    return logp, hidden


def make_params(key):
    """Deterministic synthetic init, uniform(-1/sqrt(H), 1/sqrt(H)) like nn.RNN."""
    bound = 1.0 / math.sqrt(HIDDEN_SIZE)
    ks = jax.random.split(key, 9)
    u = lambda kk, shape: jax.random.uniform(kk, shape, jnp.float32,
                                             -bound, bound)
    return dict(
        wih_f=u(ks[0], (INPUT_SIZE, HIDDEN_SIZE)),     # W_ih_fwd^T
        whh_f=u(ks[1], (HIDDEN_SIZE, HIDDEN_SIZE)),    # W_hh_fwd^T
        b_f=u(ks[2], (1, HIDDEN_SIZE)),                # b_ih_fwd + b_hh_fwd
        wih_b=u(ks[3], (INPUT_SIZE, HIDDEN_SIZE)),     # W_ih_bwd^T
        whh_b=u(ks[4], (HIDDEN_SIZE, HIDDEN_SIZE)),    # W_hh_bwd^T
        b_b=u(ks[5], (1, HIDDEN_SIZE)),                # b_ih_bwd + b_hh_bwd
        w_out_f=u(ks[6], (HIDDEN_SIZE, OUTPUT_SIZE)),  # top half of out.weight^T
        w_out_b=u(ks[7], (HIDDEN_SIZE, OUTPUT_SIZE)),  # bottom half of out.weight^T
        b_out=u(ks[8], (1, OUTPUT_SIZE)),
    )


def ref_forward(x, h0, p):
    """Pure-JAX reference mirroring the PyTorch forward (eval mode)."""
    h0 = h0.reshape(2, HIDDEN_SIZE)

    def run(xs, h, wih, whh, b):
        def step(h, xt):
            h_new = jnp.tanh(xt[None, :] @ wih + h @ whh + b)
            return h_new, None
        h, _ = lax.scan(step, h, xs)
        return h

    h_f = run(x, h0[0:1], p["wih_f"], p["whh_f"], p["b_f"])
    h_b = run(x[::-1], h0[1:2], p["wih_b"], p["whh_b"], p["b_b"])
    logits = h_f @ p["w_out_f"] + h_b @ p["w_out_b"] + p["b_out"]
    logp = jax.nn.log_softmax(logits, axis=1)
    hidden = jnp.stack([h_f[0], h_b[0]], axis=0).reshape(2, 1, HIDDEN_SIZE)
    return logp, hidden


if __name__ == "__main__":
    root = jax.random.PRNGKey(0)
    k_param, k_x, k_h = jax.random.split(root, 3)

    params = make_params(k_param)
    packed = pack_params(params)   # one-time, XLA-side packing (1 param DMA/call)
    x = jax.random.normal(k_x, (SEQ_LEN, INPUT_SIZE), jnp.float32)
    h0 = jax.random.uniform(k_h, (2, 1, HIDDEN_SIZE), jnp.float32)  # init_hidden_random

    logp, hidden = rnn_light_forward(x, h0, packed)
    jax.block_until_ready((logp, hidden))

    logp_ref, hidden_ref = ref_forward(x, h0, params)
    np.testing.assert_allclose(np.asarray(logp), np.asarray(logp_ref),
                               rtol=1e-4, atol=1e-4)
    np.testing.assert_allclose(np.asarray(hidden), np.asarray(hidden_ref),
                               rtol=1e-4, atol=1e-4)

    print("KERNEL_OK")
</pallas_src>

<mosaic_0001>
module attributes {stable_mosaic.version = 11 : i64} {
  func.func @rnn_light_kernel(%arg0: memref<16x128xf32, #tpu.memory_space<vmem>>, %arg1: memref<400x128xf32, #tpu.memory_space<vmem>>, %arg2: memref<8x128xf32, #tpu.memory_space<vmem>>) attributes {dimension_semantics = [], scalar_prefetch = 0 : i64, scratch_operands = 0 : i64, tpu.core_type = #tpu.core_type<tc>} {
    %c0 = arith.constant 0 : index
    %c0_0 = arith.constant 0 : index
    %0 = vector.load %arg0[%c0, %c0_0] : memref<16x128xf32, #tpu.memory_space<vmem>>, vector<8x128xf32>
    %c0_1 = arith.constant 0 : index
    %c0_2 = arith.constant 0 : index
    %1 = vector.load %arg1[%c0_1, %c0_2] : memref<400x128xf32, #tpu.memory_space<vmem>>, vector<128x128xf32>
    %cst = arith.constant dense<0.000000e+00> : vector<8x128xf32>
    %2 = tpu.matmul %0, %1, %cst {dimension_numbers = #tpu.dot_dimension_numbers<[1], [0], [0], [1], [0, 0, 1, 1], [], []>} : vector<8x128xf32>, vector<128x128xf32>, vector<8x128xf32> -> vector<8x128xf32>
    %c128 = arith.constant 128 : index
    %c0_3 = arith.constant 0 : index
    %3 = vector.load %arg1[%c128, %c0_3] : memref<400x128xf32, #tpu.memory_space<vmem>>, vector<1x128xf32>
    %4 = vector.broadcast %3 : vector<1x128xf32> to vector<8x128xf32>
    %5 = arith.addf %2, %4 : vector<8x128xf32>
    %c136 = arith.constant 136 : index
    %c0_4 = arith.constant 0 : index
    %6 = vector.load %arg1[%c136, %c0_4] : memref<400x128xf32, #tpu.memory_space<vmem>>, vector<128x128xf32>
    %c8 = arith.constant 8 : index
    %c0_5 = arith.constant 0 : index
    %7 = vector.load %arg0[%c8, %c0_5] : memref<16x128xf32, #tpu.memory_space<vmem>>, vector<1x128xf32>
    %8 = vector.extract_strided_slice %5 {offsets = [0, 0], sizes = [1, 128], strides = [1, 1]} : vector<8x128xf32> to vector<1x128xf32>
    %cst_6 = arith.constant dense<0.000000e+00> : vector<1x128xf32>
    %9 = tpu.matmul %7, %6, %cst_6 {dimension_numbers = #tpu.dot_dimension_numbers<[1], [0], [0], [1], [0, 0, 1, 1], [], []>} : vector<1x128xf32>, vector<128x128xf32>, vector<1x128xf32> -> vector<1x128xf32>
    %10 = arith.addf %8, %9 : vector<1x128xf32>
    %11 = math.tanh %10 : vector<1x128xf32>
    %12 = vector.extract_strided_slice %5 {offsets = [1, 0], sizes = [1, 128], strides = [1, 1]} : vector<8x128xf32> to vector<1x128xf32>
    %cst_7 = arith.constant dense<0.000000e+00> : vector<1x128xf32>
    %13 = tpu.matmul %11, %6, %cst_7 {dimension_numbers = #tpu.dot_dimension_numbers<[1], [0], [0], [1], [0, 0, 1, 1], [], []>} : vector<1x128xf32>, vector<128x128xf32>, vector<1x128xf32> -> vector<1x128xf32>
    %14 = arith.addf %12, %13 : vector<1x128xf32>
    %15 = math.tanh %14 : vector<1x128xf32>
    %16 = vector.extract_strided_slice %5 {offsets = [2, 0], sizes = [1, 128], strides = [1, 1]} : vector<8x128xf32> to vector<1x128xf32>
    %cst_8 = arith.constant dense<0.000000e+00> : vector<1x128xf32>
    %17 = tpu.matmul %15, %6, %cst_8 {dimension_numbers = #tpu.dot_dimension_numbers<[1], [0], [0], [1], [0, 0, 1, 1], [], []>} : vector<1x128xf32>, vector<128x128xf32>, vector<1x128xf32> -> vector<1x128xf32>
    %18 = arith.addf %16, %17 : vector<1x128xf32>
    %19 = math.tanh %18 : vector<1x128xf32>
    %20 = vector.extract_strided_slice %5 {offsets = [3, 0], sizes = [1, 128], strides = [1, 1]} : vector<8x128xf32> to vector<1x128xf32>
    %cst_9 = arith.constant dense<0.000000e+00> : vector<1x128xf32>
    %21 = tpu.matmul %19, %6, %cst_9 {dimension_numbers = #tpu.dot_dimension_numbers<[1], [0], [0], [1], [0, 0, 1, 1], [], []>} : vector<1x128xf32>, vector<128x128xf32>, vector<1x128xf32> -> vector<1x128xf32>
    %22 = arith.addf %20, %21 : vector<1x128xf32>
    %23 = math.tanh %22 : vector<1x128xf32>
    %24 = vector.extract_strided_slice %5 {offsets = [4, 0], sizes = [1, 128], strides = [1, 1]} : vector<8x128xf32> to vector<1x128xf32>
    %cst_10 = arith.constant dense<0.000000e+00> : vector<1x128xf32>
    %25 = tpu.matmul %23, %6, %cst_10 {dimension_numbers = #tpu.dot_dimension_numbers<[1], [0], [0], [1], [0, 0, 1, 1], [], []>} : vector<1x128xf32>, vector<128x128xf32>, vector<1x128xf32> -> vector<1x128xf32>
    %26 = arith.addf %24, %25 : vector<1x128xf32>
    %27 = math.tanh %26 : vector<1x128xf32>
    %28 = vector.extract_strided_slice %5 {offsets = [5, 0], sizes = [1, 128], strides = [1, 1]} : vector<8x128xf32> to vector<1x128xf32>
    %cst_11 = arith.constant dense<0.000000e+00> : vector<1x128xf32>
    %29 = tpu.matmul %27, %6, %cst_11 {dimension_numbers = #tpu.dot_dimension_numbers<[1], [0], [0], [1], [0, 0, 1, 1], [], []>} : vector<1x128xf32>, vector<128x128xf32>, vector<1x128xf32> -> vector<1x128xf32>
    %30 = arith.addf %28, %29 : vector<1x128xf32>
    %31 = math.tanh %30 : vector<1x128xf32>
    %32 = vector.extract_strided_slice %5 {offsets = [6, 0], sizes = [1, 128], strides = [1, 1]} : vector<8x128xf32> to vector<1x128xf32>
    %cst_12 = arith.constant dense<0.000000e+00> : vector<1x128xf32>
    %33 = tpu.matmul %31, %6, %cst_12 {dimension_numbers = #tpu.dot_dimension_numbers<[1], [0], [0], [1], [0, 0, 1, 1], [], []>} : vector<1x128xf32>, vector<128x128xf32>, vector<1x128xf32> -> vector<1x128xf32>
    %34 = arith.addf %32, %33 : vector<1x128xf32>
    %35 = math.tanh %34 : vector<1x128xf32>
    %36 = vector.extract_strided_slice %5 {offsets = [7, 0], sizes = [1, 128], strides = [1, 1]} : vector<8x128xf32> to vector<1x128xf32>
    %cst_13 = arith.constant dense<0.000000e+00> : vector<1x128xf32>
    %37 = tpu.matmul %35, %6, %cst_13 {dimension_numbers = #tpu.dot_dimension_numbers<[1], [0], [0], [1], [0, 0, 1, 1], [], []>} : vector<1x128xf32>, vector<128x128xf32>, vector<1x128xf32> -> vector<1x128xf32>
    %38 = arith.addf %36, %37 : vector<1x128xf32>
    %39 = math.tanh %38 : vector<1x128xf32>
    %c264 = arith.constant 264 : index
    %c0_14 = arith.constant 0 : index
    %40 = vector.load %arg1[%c264, %c0_14] : memref<400x128xf32, #tpu.memory_space<vmem>>, vector<128x128xf32>
    %cst_15 = arith.constant dense<0.000000e+00> : vector<1x128xf32>
    %41 = tpu.matmul %39, %40, %cst_15 {dimension_numbers = #tpu.dot_dimension_numbers<[1], [0], [0], [1], [0, 0, 1, 1], [], []>} : vector<1x128xf32>, vector<128x128xf32>, vector<1x128xf32> -> vector<1x128xf32>
    %c392 = arith.constant 392 : index
    %c0_16 = arith.constant 0 : index
    %42 = vector.load %arg1[%c392, %c0_16] : memref<400x128xf32, #tpu.memory_space<vmem>>, vector<1x128xf32>
    %43 = arith.addf %41, %42 : vector<1x128xf32>
    %cst_17 = arith.constant dense<0xFF800000> : vector<1xf32>
    %44 = vector.multi_reduction <maximumf>, %43, %cst_17 [1] : vector<1x128xf32> to vector<1xf32>
    %45 = vector.shape_cast %44 : vector<1xf32> to vector<1x1xf32>
    %46 = vector.broadcast %45 : vector<1x1xf32> to vector<1x128xf32>
    %47 = arith.subf %43, %46 : vector<1x128xf32>
    %48 = math.exp %47 : vector<1x128xf32>
    %cst_18 = arith.constant dense<0.000000e+00> : vector<1xf32>
    %49 = vector.multi_reduction <add>, %48, %cst_18 [1] : vector<1x128xf32> to vector<1xf32>
    %50 = vector.shape_cast %49 : vector<1xf32> to vector<1x1xf32>
    %51 = math.log %50 : vector<1x1xf32>
    %52 = arith.addf %45, %51 : vector<1x1xf32>
    %53 = vector.broadcast %52 : vector<1x1xf32> to vector<1x128xf32>
    %54 = arith.subf %43, %53 : vector<1x128xf32>
    %cst_19 = arith.constant 0.000000e+00 : f32
    %55 = vector.broadcast %cst_19 : f32 to vector<6x128xf32>
    %56 = tpu.concatenate %54, %39, %55 in 0 : vector<1x128xf32>, vector<1x128xf32>, vector<6x128xf32> -> vector<8x128xf32>
    %c0_20 = arith.constant 0 : index
    %c0_21 = arith.constant 0 : index
    %57 = vector.load %arg2[%c0_20, %c0_21] : memref<8x128xf32, #tpu.memory_space<vmem>>, vector<8x128xf32>
    tpu.vector_store %arg2[%c0_20, %c0_21], %56 {strides = array<i32>} : memref<8x128xf32, #tpu.memory_space<vmem>>, vector<8x128xf32>,
    return
  }
}

</mosaic_0001>

<bundles_post_ra>
// kernel: squeeze.1
= control target key start
LH: loop header
LB: loop body
LE: loop exit
PB: predicated region body
PF: predicated region fallthrough
CT: control target
= control target key end

     0   :  { %s85_s0 = inlined_call_operand.vmem [shape: f32[64], index: 0, kind: input, shape index: {}]   ;;  %s86_s1 = inlined_call_operand.hbm [shape: f32[2,1,32], index: 1, kind: output, shape index: {}]  }
   0x1   :  { %v5_v0 = vld [vmem:[%s85_s0] sm:$0x1] }
   0x2   :  { %2 = vsyncpa [#allocation1], 0  ;;  %6 = vst [vmem:[#allocation3] sm:$0x1] %v5_v0  ;;  %vm8_vm0 = vcmask 261120   ;;  %s58_s0 = smov 96  }
   0x3   :  { %s59_s8 = smov [#allocation0]  }
   0x4   :  { %s26_s9 = sshll.u32 %s59_s8, 4  ;;  %s27_s9 = int_to_ptr.vmem [resolvable:$true] %s26_s9 }
   0x5   :  { %s34_s10 = scalar_lea.vmem %s27_s9, 32  ;;  %p39_p1 = scmp.lt.s32.totalorder %s27_s9, %s27_s9 }
   0x6   :  { %p35_p0 = scmp.ne.s32.totalorder %s27_s9, %s34_s10  ;;  %p40_p2 = scmp.lt.s32.totalorder %s34_s10, %s34_s10 }
   0x8   :  { %p41_p3 = por %p40_p2, %p39_p1 }
   0x9   :  { %v10_v1 = vld [vmem:[#allocation3] sm:$0x1]  }
   0xa   :  { %v7_v2 = vld [vmem:[#allocation3] sm:$0x1]   ;;  %11 = vrot.lane.b32.xlu0 %v10_v1, %s58_s0  ;;  %p42_p4 = pnand %p41_p3, %p35_p0 }
   0xb   :  { %9 = vst.msk [vmem:[#allocation2] sm:$0x1] %vm8_vm0, %v7_v2  }
  0x7c   :  { %v12_v3 = vpop.permute.xlu0 %11  }
  0x7d   :  { %15 = vst.msk [vmem:[#allocation2 + $0x1] sm:$0x1] %vm8_vm0, %v12_v3  }
  0x84   :  { %v19_v4 = vld [vmem:[#allocation2] sm:$0x3] }
  0x85   :  { %21 = vst [vmem:[#allocation0] sm:$0x3] %v19_v4 }
  0x86   :  { %45 = shalt.err (!%p42_p4)
}
  0x87   :  { %s46_s13 = scalar_lea.hbm %s86_s1, 32 }
  0x88   :  { %p47_p5 = scmp.ne.s32.totalorder %s86_s1, %s46_s13  ;;  %p50_p6 = scmp.lt.u32.totalorder %s46_s13, %s86_s1 }
  0x8a   :  { %p52_p7 = pnand %p50_p6, %p47_p5 }
  0x8c   :  { %55 = shalt.err (!%p52_p7)
}
  0x8d   :  { %29 = dma.vmem_to_hbm [thread:$0]  %s27_s9, 32, %s86_s1, [#allocation1]  }
  0x8e   :  { %56 = dma.done.wait [#allocation1], 32  }
  0x8f   :  { %57 = vsyncadd [#allocation1], 4294967264 }
  0x90   :  { %31 = vsyncpa [#allocation1], 1 }

// kernel: rnn_light_forward.1
= control target key start
LH: loop header
LB: loop body
LE: loop exit
PB: predicated region body
PF: predicated region fallthrough
CT: control target
= control target key end

     0   :  { %7 = vsyncpa [#allocation3], 0  ;;  %s1675_s9 = smov [#allocation2]   ;;  %s1910_s0 = inlined_call_operand.vmem [shape: f32[16,128], index: 0, kind: input, shape index: {}]   ;;  %s1911_s1 = inlined_call_operand.hbm [shape: f32[400,128], index: 1, kind: input, shape index: {}]   ;;  %s1912_s2 = inlined_call_operand.vmem [shape: f32[8,128], index: 2, kind: output, shape index: {}]  }
   0x1   :  { %s15_s10 = sshll.u32 %s1675_s9, 4  ;;  %s1651_s13 = scalar_lea.hbm %s1911_s1, 6400  ;;  %s16_s10 = int_to_ptr.vmem [resolvable:$true] %s15_s10 }
   0x2   :  { %p1652_p0 = scmp.ne.s32.totalorder %s1911_s1, %s1651_s13  ;;  %p1655_p1 = scmp.lt.u32.totalorder %s1651_s13, %s1911_s1 }
   0x4   :  { %p1657_p2 = pnand %p1655_p1, %p1652_p0 }
   0x6   :  { %1660 = shalt.err (!%p1657_p2)
}
   0x7   :  { %s1661_s18 = scalar_lea.vmem %s16_s10, 6400  ;;  %p1666_p4 = scmp.lt.s32.totalorder %s16_s10, %s16_s10 }
   0x8   :  { %p1662_p3 = scmp.ne.s32.totalorder %s16_s10, %s1661_s18  ;;  %p1667_p5 = scmp.lt.s32.totalorder %s1661_s18, %s1661_s18 }
   0xa   :  { %p1668_p6 = por %p1667_p5, %p1666_p4 }
   0xc   :  { %p1669_p7 = pnand %p1668_p6, %p1662_p3 }
   0xe   :  { %1672 = shalt.err (!%p1669_p7)
}
   0xf   :  { %s1676_s19 = smov 128   ;;  %s1677_s20 = smov 8  }
  0x10   :  { %21 = dma.hbm_to_vmem [thread:$0]  %s1911_s1, 6400, %s16_s10, [#allocation3], %s1676_s19, %s1676_s19, %s1677_s20  }
  0x11   :  { %1673 = dma.done.wait [#allocation3], 6400  }
  0x12   :  { %1674 = vsyncadd [#allocation3], 4294960896  ;;  %v1678_v0 = vmov 0.0|0.0   ;;  %vm1679_vm0 = vmmov 0   ;;  %v1680_v1 = vmov 0.0   ;;  %v26_v2 = vld [vmem:[#allocation2] sm:$0xff] }
  0x13   :  { %1385 = vmatprep.subr.bf16.mxu0 %v1678_v0  ;;  %1409 = vmatprep.subr.bf16.mxu1 %v1678_v0  ;;  %v27_v3 = vld [vmem:[#allocation2 + $0x8] sm:$0xff]  ;;  %v118_v6 = vld [vmem:[#allocation2 + $0x90] sm:$0xff]  ;;  %v29_v8 = vld [vmem:[#allocation2 + $0x18] sm:$0xff]  ;;  %vm839_vm1 = vcmask 1040384   ;;  %vm856_vm2 = vcmask 1041408  }
  0x14   :  { %1067 = vmatprep.mubr.msk.f32.mxu0 %vm1679_vm0, %v1680_v1  ;;  %1102 = vmatprep.mubr.msk.f32.mxu1 %vm1679_vm0, %v1680_v1  ;;  %v117_v4 = vld [vmem:[#allocation2 + $0x88] sm:$0xff]  ;;  %v1386_v5 = vpack.c.bf16 %v27_v3, %v26_v2  ;;  %v28_v7 = vld [vmem:[#allocation2 + $0x10] sm:$0xff]  ;;  %v119_v10 = vld [vmem:[#allocation2 + $0x98] sm:$0xff] }
  0x15   :  { %v1714_v9 = vpack.c.bf16 %v118_v6, %v117_v4  ;;  %v120_v11 = vld [vmem:[#allocation2 + $0xa0] sm:$0xff]  ;;  %v1389_v12 = vpack.c.bf16 %v29_v8, %v28_v7  ;;  %v31_v15 = vld [vmem:[#allocation2 + $0x28] sm:$0xff]  ;;  %v122_v17 = vld [vmem:[#allocation2 + $0xb0] sm:$0xff] }
  0x16   :  { %1387 = vmatpush3.bf16.msra.mxu0 %v1386_v5  ;;  %v1718_v13 = vpack.c.bf16 %v120_v11, %v119_v10  ;;  %v30_v14 = vld [vmem:[#allocation2 + $0x20] sm:$0xff]  ;;  %v121_v16 = vld [vmem:[#allocation2 + $0xa8] sm:$0xff]  ;;  %v32_v20 = vld [vmem:[#allocation2 + $0x30] sm:$0xff] }
  0x17   :  { %1411 = vmatpush3.bf16.msra.mxu1 %v1714_v9  ;;  %1388 = vmatprep.subr.bf16.mxu0 %v1678_v0  ;;  %v1392_v18 = vpack.c.bf16 %v31_v15, %v30_v14  ;;  %v1723_v19 = vpack.c.bf16 %v122_v17, %v121_v16  ;;  %v33_v21 = vld [vmem:[#allocation2 + $0x38] sm:$0xff]  ;;  %v124_v23 = vld [vmem:[#allocation2 + $0xc0] sm:$0xff]  ;;  %v35_v27 = vld [vmem:[#allocation2 + $0x48] sm:$0xff] }
  0x18   :  { %1412 = vmatprep.subr.bf16.mxu1 %v1678_v0  ;;  %v123_v22 = vld [vmem:[#allocation2 + $0xb8] sm:$0xff]  ;;  %v1395_v24 = vpack.c.bf16 %v33_v21, %v32_v20  ;;  %v34_v26 = vld [vmem:[#allocation2 + $0x40] sm:$0xff]  ;;  %v125_v28 = vld [vmem:[#allocation2 + $0xc8] sm:$0xff] }
  0x19   :  { %v1728_v25 = vpack.c.bf16 %v124_v23, %v123_v22  ;;  %v126_v29 = vld [vmem:[#allocation2 + $0xd0] sm:$0xff]  ;;  %v1398_v30 = vpack.c.bf16 %v35_v27, %v34_v26  ;;  %v37_v33 = vld [vmem:[#allocation2 + $0x58] sm:$0xff]  ;;  %v128_v35 = vld [vmem:[#allocation2 + $0xe0] sm:$0xff] }
  0x1a   :  { %1390 = vmatpush3.bf16.msra.mxu0 %v1389_v12  ;;  %v1733_v31 = vpack.c.bf16 %v126_v29, %v125_v28  ;;  %v36_v32 = vld [vmem:[#allocation2 + $0x50] sm:$0xff]  ;;  %v127_v34 = vld [vmem:[#allocation2 + $0xd8] sm:$0xff]  ;;  %v38_v38 = vld [vmem:[#allocation2 + $0x60] sm:$0xff] }
  0x1b   :  { %1414 = vmatpush3.bf16.msra.mxu1 %v1718_v13  ;;  %1391 = vmatprep.subr.bf16.mxu0 %v1678_v0  ;;  %v1401_v36 = vpack.c.bf16 %v37_v33, %v36_v32  ;;  %v1738_v37 = vpack.c.bf16 %v128_v35, %v127_v34  ;;  %v39_v39 = vld [vmem:[#allocation2 + $0x68] sm:$0xff]  ;;  %v130_v41 = vld [vmem:[#allocation2 + $0xf0] sm:$0xff]  ;;  %v41_v45 = vld [vmem:[#allocation2 + $0x78] sm:$0xff] }
  0x1c   :  { %1415 = vmatprep.subr.bf16.mxu1 %v1678_v0  ;;  %v129_v40 = vld [vmem:[#allocation2 + $0xe8] sm:$0xff]  ;;  %v1404_v42 = vpack.c.bf16 %v39_v39, %v38_v38  ;;  %v40_v44 = vld [vmem:[#allocation2 + $0x70] sm:$0xff]  ;;  %v131_v46 = vld [vmem:[#allocation2 + $0xf8] sm:$0xff] }
  0x1d   :  { %v1743_v43 = vpack.c.bf16 %v130_v41, %v129_v40  ;;  %v132_v47 = vld [vmem:[#allocation2 + $0x100] sm:$0xff]  ;;  %v1407_v48 = vpack.c.bf16 %v41_v45, %v40_v44  ;;  %v133_v51 = vld [vmem:[%s1910_s0 + $0x8] sm:$0x1]  ;;  %v750_v29 = vld [vmem:[#allocation2 + $0x110] sm:$0xff] }
  0x1e   :  { %1393 = vmatpush3.bf16.msra.mxu0 %v1392_v18  ;;  %v1748_v49 = vpack.c.bf16 %v132_v47, %v131_v46  ;;  %v25_v50 = vld [vmem:[%s1910_s0] sm:$0xff]  ;;  %v749_v28 = vld [vmem:[#allocation2 + $0x108] sm:$0xff]  ;;  %v754_v35 = vld [vmem:[#allocation2 + $0x130] sm:$0xff] }
  0x1f   :  { %1417 = vmatpush3.bf16.msra.mxu1 %v1723_v19  ;;  %1394 = vmatprep.subr.bf16.mxu0 %v1678_v0  ;;  %v864_v52 = vld [vmem:[#allocation2 + $0x80] ss:$0 sm:$0xff]  ;;  %v753_v34 = vld [vmem:[#allocation2 + $0x128] sm:$0xff]  ;;  %v758_v46 = vld [vmem:[#allocation2 + $0x150] sm:$0xff] }
  0x20   :  { %1418 = vmatprep.subr.bf16.mxu1 %v1678_v0  ;;  %v752_v32 = vld [vmem:[#allocation2 + $0x120] sm:$0xff]  ;;  %v757_v45 = vld [vmem:[#allocation2 + $0x148] sm:$0xff] }
  0x21   :  { %v756_v38 = vld [vmem:[#allocation2 + $0x140] sm:$0xff]  ;;  %v1614_v47 = vpack.c.bf16 %v758_v46, %v757_v45 }
  0x22   :  { %1396 = vmatpush3.bf16.msra.mxu0 %v1395_v24 }
  0x23   :  { %1420 = vmatpush3.bf16.msra.mxu1 %v1728_v25  ;;  %1397 = vmatprep.subr.bf16.mxu0 %v1678_v0 }
  0x24   :  { %1421 = vmatprep.subr.bf16.mxu1 %v1678_v0 }
  0x26   :  { %1399 = vmatpush3.bf16.msra.mxu0 %v1398_v30  ;;  %v751_v30 = vld [vmem:[#allocation2 + $0x118] sm:$0xff] }
  0x27   :  { %1423 = vmatpush3.bf16.msra.mxu1 %v1733_v31  ;;  %1400 = vmatprep.subr.bf16.mxu0 %v1678_v0  ;;  %v1605_v33 = vpack.c.bf16 %v752_v32, %v751_v30 }
  0x28   :  { %1424 = vmatprep.subr.bf16.mxu1 %v1678_v0 }
  0x2a   :  { %1402 = vmatpush3.bf16.msra.mxu0 %v1401_v36  ;;  %v1608_v36 = vpack.c.bf16 %v754_v35, %v753_v34 }
  0x2b   :  { %1426 = vmatpush3.bf16.msra.mxu1 %v1738_v37  ;;  %1403 = vmatprep.subr.bf16.mxu0 %v1678_v0 }
  0x2c   :  { %1427 = vmatprep.subr.bf16.mxu1 %v1678_v0 }
  0x2e   :  { %1405 = vmatpush3.bf16.msra.mxu0 %v1404_v42 }
  0x2f   :  { %1429 = vmatpush3.bf16.msra.mxu1 %v1743_v43  ;;  %1406 = vmatprep.subr.bf16.mxu0 %v1678_v0 }
  0x30   :  { %1430 = vmatprep.subr.bf16.mxu1 %v1678_v0 }
  0x32   :  { %1408 = vmatpush3.bf16.msra.mxu0 %v1407_v48  ;;  %v759_v48 = vld [vmem:[#allocation2 + $0x158] sm:$0xff] }
  0x33   :  { %1432 = vmatpush3.bf16.msra.mxu1 %v1748_v49  ;;  %1433 = vmatprep.subr.bf16.mxu0 %v1678_v0 }
  0x34   :  { %1457 = vmatprep.subr.bf16.mxu1 %v1678_v0 }
  0x35   :  { %1068 = vmatmul.mubr.f32.vlgmr.msra.gmra.mrb[0].mxu0 %v25_v50 }
  0x36   :  { %1103 = vmatmul.mubr.f32.vlgmr.msra.gmra.mrb[0].mxu1 %v133_v51  ;;  %1435 = vmatpush3.bf16.msra.mxu0 %v1714_v9  ;;  %v761_v51 = vld [vmem:[#allocation2 + $0x168] sm:$0xff] }
  0x37   :  { %1436 = vmatprep.subr.bf16.mxu0 %v1678_v0  ;;  %1137 = vmatprep.mubr.msk.f32.mxu0 %vm1679_vm0, %v1680_v1 }
  0x38   :  { %1459 = vmatpush3.bf16.msra.mxu1 %v1714_v9  ;;  %1172 = vmatprep.mubr.msk.f32.mxu1 %vm1679_vm0, %v1680_v1 }
  0x39   :  { %1460 = vmatprep.subr.bf16.mxu1 %v1678_v0 }
  0x3a   :  { %1438 = vmatpush3.bf16.msra.mxu0 %v1718_v13 }
  0x3b   :  { %1439 = vmatprep.subr.bf16.mxu0 %v1678_v0 }
  0x3c   :  { %1462 = vmatpush3.bf16.msra.mxu1 %v1718_v13 }
  0x3d   :  { %1463 = vmatprep.subr.bf16.mxu1 %v1678_v0 }
  0x3e   :  { %1441 = vmatpush3.bf16.msra.mxu0 %v1723_v19 }
  0x3f   :  { %1442 = vmatprep.subr.bf16.mxu0 %v1678_v0 }
  0x40   :  { %1465 = vmatpush3.bf16.msra.mxu1 %v1723_v19 }
  0x41   :  { %1466 = vmatprep.subr.bf16.mxu1 %v1678_v0 }
  0x42   :  { %1444 = vmatpush3.bf16.msra.mxu0 %v1728_v25 }
  0x43   :  { %1445 = vmatprep.subr.bf16.mxu0 %v1678_v0 }
  0x44   :  { %1468 = vmatpush3.bf16.msra.mxu1 %v1728_v25 }
  0x45   :  { %1469 = vmatprep.subr.bf16.mxu1 %v1678_v0 }
  0x46   :  { %1447 = vmatpush3.bf16.msra.mxu0 %v1733_v31 }
  0x47   :  { %1448 = vmatprep.subr.bf16.mxu0 %v1678_v0 }
  0x48   :  { %1471 = vmatpush3.bf16.msra.mxu1 %v1733_v31 }
  0x49   :  { %1472 = vmatprep.subr.bf16.mxu1 %v1678_v0 }
  0x4a   :  { %1450 = vmatpush3.bf16.msra.mxu0 %v1738_v37 }
  0x4b   :  { %1451 = vmatprep.subr.bf16.mxu0 %v1678_v0 }
  0x4c   :  { %1474 = vmatpush3.bf16.msra.mxu1 %v1738_v37 }
  0x4d   :  { %1475 = vmatprep.subr.bf16.mxu1 %v1678_v0 }
  0x4e   :  { %1453 = vmatpush3.bf16.msra.mxu0 %v1743_v43 }
  0x4f   :  { %1454 = vmatprep.subr.bf16.mxu0 %v1678_v0 }
  0x50   :  { %1477 = vmatpush3.bf16.msra.mxu1 %v1743_v43 }
  0x51   :  { %1478 = vmatprep.subr.bf16.mxu1 %v1678_v0 }
  0x52   :  { %1456 = vmatpush3.bf16.msra.mxu0 %v1748_v49 }
  0x53   :  { %1481 = vmatprep.subr.bf16.mxu0 %v1678_v0 }
  0x54   :  { %1480 = vmatpush3.bf16.msra.mxu1 %v1748_v49 }
  0x55   :  { %1505 = vmatprep.subr.bf16.mxu1 %v1678_v0 }
 0x108   :  { %v113_v53 = vpop.f32.mrb[0].mxu0 }
 0x109   :  { %v1796_v54 = vadd.f32 %v864_v52, %v113_v53  ;;  %v1069_v55 = vpop.f32.mrb[1].mxu0  ;;  %v200_v56 = vpop.f32.mrb[0].mxu1  ;;  %v762_v52 = vld [vmem:[#allocation2 + $0x170] sm:$0xff] }
 0x10a   :  { %v1104_v57 = vpop.f32.mrb[1].mxu1  ;;  %v1620_v53 = vpack.c.bf16 %v762_v52, %v761_v51  ;;  %v763_v55 = vld [vmem:[#allocation2 + $0x178] sm:$0xff] }
 0x10b   :  { %v204_v58 = vadd.f32 %v200_v56, %v1796_v54  ;;  %v764_v56 = vld [vmem:[#allocation2 + $0x180] sm:$0xff] }
 0x10c   :  { %v1623_v57 = vpack.c.bf16 %v764_v56, %v763_v55 }
 0x10d   :  { %1631 = vtanh.f32 %v204_v58 }
 0x117   :  { %v1632_v59 = vpop.eup %1631 }
 0x118   :  { %1138 = vmatmul.mubr.f32.vlgmr.msra.gmra.mrb[2].mxu0 %v1632_v59 }
 0x119   :  { %1483 = vmatpush3.bf16.msra.mxu0 %v1714_v9  ;;  %1207 = vmatprep.mubr.msk.f32.mxu0 %vm1679_vm0, %v1680_v1 }
 0x11a   :  { %1484 = vmatprep.subr.bf16.mxu0 %v1678_v0 }
 0x11d   :  { %1486 = vmatpush3.bf16.msra.mxu0 %v1718_v13 }
 0x11e   :  { %1487 = vmatprep.subr.bf16.mxu0 %v1678_v0 }
 0x121   :  { %1489 = vmatpush3.bf16.msra.mxu0 %v1723_v19 }
 0x122   :  { %1490 = vmatprep.subr.bf16.mxu0 %v1678_v0 }
 0x125   :  { %1492 = vmatpush3.bf16.msra.mxu0 %v1728_v25 }
 0x126   :  { %1493 = vmatprep.subr.bf16.mxu0 %v1678_v0 }
 0x129   :  { %1495 = vmatpush3.bf16.msra.mxu0 %v1733_v31 }
 0x12a   :  { %1496 = vmatprep.subr.bf16.mxu0 %v1678_v0 }
 0x12d   :  { %1498 = vmatpush3.bf16.msra.mxu0 %v1738_v37 }
 0x12e   :  { %1499 = vmatprep.subr.bf16.mxu0 %v1678_v0 }
 0x131   :  { %1501 = vmatpush3.bf16.msra.mxu0 %v1743_v43 }
 0x132   :  { %1502 = vmatprep.subr.bf16.mxu0 %v1678_v0 }
 0x135   :  { %1504 = vmatpush3.bf16.msra.mxu0 %v1748_v49 }
 0x136   :  { %1529 = vmatprep.subr.bf16.mxu0 %v1678_v0 }
 0x1eb   :  { %v272_v60 = vpop.f32.mrb[2].mxu0 }
 0x1ec   :  { %v277_v61 = vrot.slane %v272_v60, 7  ;;  %v1139_v62 = vpop.f32.mrb[3].mxu0 }
 0x1ee   :  { %v279_v63 = vadd.f32 %v277_v61, %v1796_v54 }
 0x1f0   :  { %1633 = vtanh.f32 %v279_v63 }
 0x1fa   :  { %v1634_v2 = vpop.eup %1633 }
 0x1fb   :  { %v282_v3 = vrot.slane %v1634_v2, 1  ;;  %v765_v2 = vld [vmem:[#allocation2 + $0x188] sm:$0x1] }
 0x1fd   :  { %1173 = vmatmul.mubr.f32.vlgmr.msra.gmra.mrb[2].mxu1 %v282_v3 }
 0x1fe   :  { %1507 = vmatpush3.bf16.msra.mxu1 %v1714_v9  ;;  %1242 = vmatprep.mubr.msk.f32.mxu1 %vm1679_vm0, %v1680_v1 }
 0x1ff   :  { %1508 = vmatprep.subr.bf16.mxu1 %v1678_v0 }
 0x202   :  { %1510 = vmatpush3.bf16.msra.mxu1 %v1718_v13 }
 0x203   :  { %1511 = vmatprep.subr.bf16.mxu1 %v1678_v0 }
 0x206   :  { %1513 = vmatpush3.bf16.msra.mxu1 %v1723_v19 }
 0x207   :  { %1514 = vmatprep.subr.bf16.mxu1 %v1678_v0 }
 0x20a   :  { %1516 = vmatpush3.bf16.msra.mxu1 %v1728_v25 }
 0x20b   :  { %1517 = vmatprep.subr.bf16.mxu1 %v1678_v0 }
 0x20e   :  { %1519 = vmatpush3.bf16.msra.mxu1 %v1733_v31 }
 0x20f   :  { %1520 = vmatprep.subr.bf16.mxu1 %v1678_v0 }
 0x212   :  { %1522 = vmatpush3.bf16.msra.mxu1 %v1738_v37 }
 0x213   :  { %1523 = vmatprep.subr.bf16.mxu1 %v1678_v0 }
 0x216   :  { %1525 = vmatpush3.bf16.msra.mxu1 %v1743_v43 }
 0x217   :  { %1526 = vmatprep.subr.bf16.mxu1 %v1678_v0 }
 0x21a   :  { %1528 = vmatpush3.bf16.msra.mxu1 %v1748_v49 }
 0x21b   :  { %1553 = vmatprep.subr.bf16.mxu1 %v1678_v0 }
 0x2d0   :  { %v350_v4 = vpop.f32.mrb[2].mxu1 }
 0x2d1   :  { %v355_v5 = vrot.slane %v350_v4, 6  ;;  %v1174_v6 = vpop.f32.mrb[3].mxu1 }
 0x2d3   :  { %v357_v7 = vadd.f32 %v355_v5, %v1796_v54 }
 0x2d5   :  { %1635 = vtanh.f32 %v357_v7 }
 0x2df   :  { %v1636_v8 = vpop.eup %1635 }
 0x2e0   :  { %v360_v10 = vrot.slane %v1636_v8, 2 }
 0x2e2   :  { %1208 = vmatmul.mubr.f32.vlgmr.msra.gmra.mrb[4].mxu0 %v360_v10 }
 0x2e3   :  { %1531 = vmatpush3.bf16.msra.mxu0 %v1714_v9  ;;  %1277 = vmatprep.mubr.msk.f32.mxu0 %vm1679_vm0, %v1680_v1 }
 0x2e4   :  { %1532 = vmatprep.subr.bf16.mxu0 %v1678_v0 }
 0x2e7   :  { %1534 = vmatpush3.bf16.msra.mxu0 %v1718_v13 }
 0x2e8   :  { %1535 = vmatprep.subr.bf16.mxu0 %v1678_v0 }
 0x2eb   :  { %1537 = vmatpush3.bf16.msra.mxu0 %v1723_v19 }
 0x2ec   :  { %1538 = vmatprep.subr.bf16.mxu0 %v1678_v0 }
 0x2ef   :  { %1540 = vmatpush3.bf16.msra.mxu0 %v1728_v25 }
 0x2f0   :  { %1541 = vmatprep.subr.bf16.mxu0 %v1678_v0 }
 0x2f3   :  { %1543 = vmatpush3.bf16.msra.mxu0 %v1733_v31 }
 0x2f4   :  { %1544 = vmatprep.subr.bf16.mxu0 %v1678_v0 }
 0x2f7   :  { %1546 = vmatpush3.bf16.msra.mxu0 %v1738_v37 }
 0x2f8   :  { %1547 = vmatprep.subr.bf16.mxu0 %v1678_v0 }
 0x2fb   :  { %1549 = vmatpush3.bf16.msra.mxu0 %v1743_v43 }
 0x2fc   :  { %1550 = vmatprep.subr.bf16.mxu0 %v1678_v0 }
 0x2ff   :  { %1552 = vmatpush3.bf16.msra.mxu0 %v1748_v49 }
 0x300   :  { %1577 = vmatprep.subr.bf16.mxu0 %v1678_v0 }
 0x3b5   :  { %v428_v11 = vpop.f32.mrb[4].mxu0 }
 0x3b6   :  { %v433_v12 = vrot.slane %v428_v11, 5  ;;  %v1209_v14 = vpop.f32.mrb[5].mxu0 }
 0x3b8   :  { %v435_v15 = vadd.f32 %v433_v12, %v1796_v54 }
 0x3ba   :  { %1637 = vtanh.f32 %v435_v15 }
 0x3c4   :  { %v1638_v16 = vpop.eup %1637 }
 0x3c5   :  { %v438_v17 = vrot.slane %v1638_v16, 3 }
 0x3c7   :  { %1243 = vmatmul.mubr.f32.vlgmr.msra.gmra.mrb[4].mxu1 %v438_v17 }
 0x3c8   :  { %1555 = vmatpush3.bf16.msra.mxu1 %v1714_v9  ;;  %1312 = vmatprep.mubr.msk.f32.mxu1 %vm1679_vm0, %v1680_v1 }
 0x3c9   :  { %1556 = vmatprep.subr.bf16.mxu1 %v1678_v0 }
 0x3cc   :  { %1558 = vmatpush3.bf16.msra.mxu1 %v1718_v13 }
 0x3cd   :  { %1559 = vmatprep.subr.bf16.mxu1 %v1678_v0 }
 0x3d0   :  { %1561 = vmatpush3.bf16.msra.mxu1 %v1723_v19 }
 0x3d1   :  { %1562 = vmatprep.subr.bf16.mxu1 %v1678_v0 }
 0x3d4   :  { %1564 = vmatpush3.bf16.msra.mxu1 %v1728_v25 }
 0x3d5   :  { %1565 = vmatprep.subr.bf16.mxu1 %v1678_v0 }
 0x3d8   :  { %1567 = vmatpush3.bf16.msra.mxu1 %v1733_v31 }
 0x3d9   :  { %1568 = vmatprep.subr.bf16.mxu1 %v1678_v0 }
 0x3dc   :  { %1570 = vmatpush3.bf16.msra.mxu1 %v1738_v37 }
 0x3dd   :  { %1571 = vmatprep.subr.bf16.mxu1 %v1678_v0 }
 0x3e0   :  { %1573 = vmatpush3.bf16.msra.mxu1 %v1743_v43 }
 0x3e1   :  { %1574 = vmatprep.subr.bf16.mxu1 %v1678_v0 }
 0x3e4   :  { %1576 = vmatpush3.bf16.msra.mxu1 %v1748_v49 }
 0x3e5   :  { %1601 = vmatprep.subr.bf16.mxu1 %v1678_v0 }
 0x49a   :  { %v506_v18 = vpop.f32.mrb[4].mxu1 }
 0x49b   :  { %v511_v20 = vrot.slane %v506_v18, 4  ;;  %v1244_v21 = vpop.f32.mrb[5].mxu1 }
 0x49d   :  { %v513_v22 = vadd.f32 %v511_v20, %v1796_v54 }
 0x49f   :  { %1639 = vtanh.f32 %v513_v22 }
 0x4a9   :  { %v1640_v23 = vpop.eup %1639 }
 0x4aa   :  { %v516_v24 = vrot.slane %v1640_v23, 4 }
 0x4ac   :  { %1278 = vmatmul.mubr.f32.vlgmr.msra.gmra.mrb[6].mxu0 %v516_v24 }
 0x4ad   :  { %1579 = vmatpush3.bf16.msra.mxu0 %v1714_v9  ;;  %1347 = vmatprep.mubr.msk.f32.mxu0 %vm1679_vm0, %v1680_v1 }
 0x4ae   :  { %1580 = vmatprep.subr.bf16.mxu0 %v1678_v0 }
 0x4b1   :  { %1582 = vmatpush3.bf16.msra.mxu0 %v1718_v13 }
 0x4b2   :  { %1583 = vmatprep.subr.bf16.mxu0 %v1678_v0 }
 0x4b5   :  { %1585 = vmatpush3.bf16.msra.mxu0 %v1723_v19 }
 0x4b6   :  { %1586 = vmatprep.subr.bf16.mxu0 %v1678_v0 }
 0x4b9   :  { %1588 = vmatpush3.bf16.msra.mxu0 %v1728_v25 }
 0x4ba   :  { %1589 = vmatprep.subr.bf16.mxu0 %v1678_v0 }
 0x4bd   :  { %1591 = vmatpush3.bf16.msra.mxu0 %v1733_v31  ;;  %v1602_v31 = vpack.c.bf16 %v750_v29, %v749_v28 }
 0x4be   :  { %1592 = vmatprep.subr.bf16.mxu0 %v1678_v0 }
 0x4c1   :  { %1594 = vmatpush3.bf16.msra.mxu0 %v1738_v37  ;;  %v755_v37 = vld [vmem:[#allocation2 + $0x138] sm:$0xff] }
 0x4c2   :  { %1595 = vmatprep.subr.bf16.mxu0 %v1678_v0  ;;  %v1611_v39 = vpack.c.bf16 %v756_v38, %v755_v37 }
 0x4c5   :  { %1597 = vmatpush3.bf16.msra.mxu0 %v1743_v43 }
 0x4c6   :  { %1598 = vmatprep.subr.bf16.mxu0 %v1678_v0 }
 0x4c9   :  { %1600 = vmatpush3.bf16.msra.mxu0 %v1748_v49  ;;  %v760_v49 = vld [vmem:[#allocation2 + $0x160] sm:$0xff] }
 0x4ca   :  { %v1617_v50 = vpack.c.bf16 %v760_v49, %v759_v48 }
 0x57f   :  { %v584_v9 = vpop.f32.mrb[6].mxu0 }
 0x580   :  { %v589_v13 = vrot.slane %v584_v9, 3  ;;  %v1279_v19 = vpop.f32.mrb[7].mxu0 }
 0x582   :  { %v591_v25 = vadd.f32 %v589_v13, %v1796_v54 }
 0x584   :  { %1641 = vtanh.f32 %v591_v25 }
 0x58e   :  { %v1642_v26 = vpop.eup %1641 }
 0x58f   :  { %v594_v27 = vrot.slane %v1642_v26, 5 }
 0x591   :  { %1313 = vmatmul.mubr.f32.vlgmr.msra.gmra.mrb[6].mxu1 %v594_v27 }
 0x592   :  { %1382 = vmatprep.mubr.msk.f32.mxu1 %vm1679_vm0, %v1680_v1  ;;  %1603 = vmatpush3.bf16.msra.mxu1 %v1602_v31 }
 0x593   :  { %1604 = vmatprep.subr.bf16.mxu1 %v1678_v0 }
 0x596   :  { %1606 = vmatpush3.bf16.msra.mxu1 %v1605_v33 }
 0x597   :  { %1607 = vmatprep.subr.bf16.mxu1 %v1678_v0 }
 0x59a   :  { %1609 = vmatpush3.bf16.msra.mxu1 %v1608_v36 }
 0x59b   :  { %1610 = vmatprep.subr.bf16.mxu1 %v1678_v0 }
 0x59e   :  { %1612 = vmatpush3.bf16.msra.mxu1 %v1611_v39 }
 0x59f   :  { %1613 = vmatprep.subr.bf16.mxu1 %v1678_v0 }
 0x5a2   :  { %1615 = vmatpush3.bf16.msra.mxu1 %v1614_v47 }
 0x5a3   :  { %1616 = vmatprep.subr.bf16.mxu1 %v1678_v0 }
 0x5a6   :  { %1618 = vmatpush3.bf16.msra.mxu1 %v1617_v50 }
 0x5a7   :  { %1619 = vmatprep.subr.bf16.mxu1 %v1678_v0 }
 0x5aa   :  { %1621 = vmatpush3.bf16.msra.mxu1 %v1620_v53 }
 0x5ab   :  { %1622 = vmatprep.subr.bf16.mxu1 %v1678_v0 }
 0x5ae   :  { %1624 = vmatpush3.bf16.msra.mxu1 %v1623_v57 }
 0x664   :  { %v662_v1 = vpop.f32.mrb[6].mxu1 }
 0x665   :  { %v667_v40 = vrot.slane %v662_v1, 2  ;;  %v1314_v41 = vpop.f32.mrb[7].mxu1 }
 0x667   :  { %v669_v42 = vadd.f32 %v667_v40, %v1796_v54 }
 0x669   :  { %1643 = vtanh.f32 %v669_v42 }
 0x673   :  { %v1644_v43 = vpop.eup %1643 }
 0x674   :  { %v672_v44 = vrot.slane %v1644_v43, 6 }
 0x676   :  { %1348 = vmatmul.mubr.f32.vlgmr.msra.gmra.mrb[8].mxu0 %v672_v44 }
 0x749   :  { %v740_v58 = vpop.f32.mrb[8].mxu0 }
 0x74a   :  { %v745_v59 = vrot.slane %v740_v58, 1  ;;  %v1349_v60 = vpop.f32.mrb[9].mxu0 }
 0x74c   :  { %v747_v61 = vadd.f32 %v745_v59, %v1796_v54 }
 0x74e   :  { %1645 = vtanh.f32 %v747_v61 }
 0x758   :  { %v1646_v62 = vpop.eup %1645 }
 0x759   :  { %v767_v63 = vrot.slane %v1646_v62, 7  ;;  %v853_v16 = vrot.slane %v1646_v62, 6 }
 0x75b   :  { %1383 = vmatmul.mubr.f32.vlgmr.msra.gmra.mrb[8].mxu1 %v767_v63 }
 0x82e   :  { %v835_v3 = vpop.f32.mrb[8].mxu1 }
 0x82f   :  { %v836_v4 = vadd.f32 %v835_v3, %v765_v2  ;;  %v1384_v5 = vpop.f32.mrb[9].mxu1 }
 0x831   :  { %v840_v0 = vsel %vm839_vm1, %v836_v4, -inf }
 0x832   :  { %841 = vmax.xlane.f32.xlu0 %v840_v0 }
 0x8bf   :  { %v842_v6 = vpop.xlane.xlu0 %841 }
 0x8c0   :  { %v843_v7 = vsub.f32 %v836_v4, %v842_v6 }
 0x8c2   :  { %v844_v8 = vmul.f32 1.442695, %v843_v7 }
 0x8c4   :  { %1647 = vpow2.f32 %v844_v8 }
 0x8ce   :  { %v1648_v10 = vpop.eup %1647 }
 0x8cf   :  { %v846_v11 = vsel %vm839_vm1, %v1648_v10, 0.0 }
 0x8d0   :  { %847 = vadd.xlane.f32.xlu0 %v846_v11 }
 0x95d   :  { %v848_v54 = vpop.xlane.xlu0 %847 }
 0x95e   :  { %1649 = vlog2.f32 %v848_v54 }
 0x968   :  { %v1650_v12 = vpop.eup %1649 }
 0x969   :  { %v850_v14 = vmul.f32 0.6931472, %v1650_v12 }
 0x96b   :  { %v851_v15 = vadd.f32 %v850_v14, %v842_v6 }
 0x96d   :  { %v852_v17 = vsub.f32 %v836_v4, %v851_v15 }
 0x96f   :  { %v855_v18 = vsel %vm839_vm1, %v852_v17, %v853_v16 }
 0x970   :  { %v857_v20 = vsel %vm856_vm2, %v855_v18, 0.0 }
 0x971   :  { %858 = vst [vmem:[%s1912_s2] sm:$0xff] %v857_v20 }
 0x972   :  { %863 = vsyncpa [#allocation3], 1 }

</bundles_post_ra>
